<compile_context>
chip_gen: v7x
topology: tpu7x:2x2x1
jax: 0.10.0
libtpu: 0.0.40
codegen_flags: <defaults>
</compile_context>

<pallas_src>
import functools

import jax
import jax.numpy as jnp
from jax.experimental import pallas as pl
from jax.experimental.pallas import tpu as pltpu

_LANES = 128
_SUBLANES = 8
_MAX_ROWS_PER_CHUNK = 2048   # (2048,128) f32 tile = 1 MiB; x2 inputs x2 buffers = 4 MiB


def _bce_dice_kernel(logits_ref, targets_ref, out_ref,
                     acc_bce, acc_inter, acc_denom, score_acc, *,
                     n_valid, batch, rows_per_chunk, smooth, use_mask):
    b = pl.program_id(0)
    r = pl.program_id(1)
    nb = pl.num_programs(0)
    nr = pl.num_programs(1)

    @pl.when((b == 0) & (r == 0))
    def _init_global():
        acc_bce[...] = jnp.zeros_like(acc_bce)
        score_acc[...] = jnp.zeros_like(score_acc)

    @pl.when(r == 0)
    def _init_sample():
        acc_inter[...] = jnp.zeros_like(acc_inter)
        acc_denom[...] = jnp.zeros_like(acc_denom)

    x = logits_ref[...].astype(jnp.float32)       # (TR, 128)
    t = targets_ref[...].astype(jnp.float32)

    # Stable BCE-with-logits:  bce = log1p(exp(-|x|)) + max(x,0) - x*t
    e = jnp.exp(-jnp.abs(x))                      # EUP
    sp = jnp.log1p(e)                             # EUP
    bce = sp + jnp.maximum(x, 0.0) - x * t
    # Exact sigmoid reusing e (no third transcendental).
    p = jnp.where(x >= 0.0, 1.0, e) / (1.0 + e)

    if use_mask:
        # Only traced in when the flattened per-sample size is ragged w.r.t.
        # the (rows_per_chunk, 128) tiling.  jnp.where (not mul) so that any
        # garbage in out-of-bounds rows (incl. NaN/Inf) cannot leak in.
        tr, lanes = x.shape
        row_idx = jax.lax.broadcasted_iota(jnp.int32, (tr, lanes), 0)
        lane_idx = jax.lax.broadcasted_iota(jnp.int32, (tr, lanes), 1)
        elem_idx = (r * rows_per_chunk + row_idx) * lanes + lane_idx
        valid = elem_idx < n_valid
        bce = jnp.where(valid, bce, 0.0)
        p = jnp.where(valid, p, 0.0)
        t = jnp.where(valid, t, 0.0)

    def fold(a):
        # (TR,128) -> (8,128): sum across sublane-tiles = pure VPU vreg adds.
        tr, lanes = a.shape
        return jnp.sum(a.reshape(tr // _SUBLANES, _SUBLANES, lanes), axis=0)

    acc_bce[...] += fold(bce)
    acc_inter[...] += fold(p * t)
    acc_denom[...] += fold(p + t)

    @pl.when(r == nr - 1)
    def _finish_sample():
        # One XLU (cross-sublane + cross-lane) reduce per sample.
        inter = jnp.sum(jnp.sum(acc_inter[...], axis=0, keepdims=True),
                        axis=1, keepdims=True)
        denom = jnp.sum(jnp.sum(acc_denom[...], axis=0, keepdims=True),
                        axis=1, keepdims=True)
        score_acc[...] += 2.0 * (inter + smooth) / (denom + smooth)

    @pl.when((b == nb - 1) & (r == nr - 1))
    def _finalize():
        bce_sum = jnp.sum(jnp.sum(acc_bce[...], axis=0, keepdims=True),
                          axis=1, keepdims=True)
        inv_n = 1.0 / float(batch * n_valid)       # compile-time constants
        inv_b = 1.0 / float(batch)
        out_ref[...] = bce_sum * inv_n + (1.0 - score_acc[...] * inv_b)


def bce_dice_loss(logits, targets):
    """Equivalent of BCEDiceLoss()(logits, targets)."""
    assert logits.shape == targets.shape
    batch = logits.shape[0]
    n_per_sample = int(logits.size) // batch

    # Flatten each sample into a lane-dense (rows, 128) slab, rows % 8 == 0.
    rows = pl.cdiv(n_per_sample, _LANES)
    rows = pl.cdiv(rows, _SUBLANES) * _SUBLANES
    pad = rows * _LANES - n_per_sample

    flat_l = logits.reshape(batch, -1)
    flat_t = targets.reshape(batch, -1)
    if pad:
        # Only for ragged per-sample sizes (extra HBM pass); the common
        # power-of-two segmentation shapes skip this entirely.
        flat_l = jnp.pad(flat_l, ((0, 0), (0, pad)))
        flat_t = jnp.pad(flat_t, ((0, 0), (0, pad)))
    l3 = flat_l.reshape(batch, rows, _LANES)
    t3 = flat_t.reshape(batch, rows, _LANES)

    tr = min(rows, _MAX_ROWS_PER_CHUNK)            # multiple of 8 by construction
    nr = pl.cdiv(rows, tr)
    use_mask = bool(pad) or (rows % tr != 0)

    kernel = functools.partial(
        _bce_dice_kernel,
        n_valid=n_per_sample,
        batch=batch,
        rows_per_chunk=tr,
        smooth=1.0,
        use_mask=use_mask)

    in_bytes = (l3.size * l3.dtype.itemsize) + (t3.size * t3.dtype.itemsize)
    cost = pl.CostEstimate(
        flops=12 * batch * n_per_sample,
        transcendentals=2 * batch * n_per_sample,
        bytes_accessed=in_bytes + 4)

    out = pl.pallas_call(
        kernel,
        out_shape=jax.ShapeDtypeStruct((1, 1), jnp.float32),
        grid_spec=pltpu.PrefetchScalarGridSpec(
            num_scalar_prefetch=0,
            grid=(batch, nr),
            in_specs=[pl.BlockSpec((None, tr, _LANES), lambda b, r: (b, r, 0)),
                      pl.BlockSpec((None, tr, _LANES), lambda b, r: (b, r, 0))],
            out_specs=pl.BlockSpec((1, 1), lambda b, r: (0, 0)),
            scratch_shapes=[pltpu.VMEM((_SUBLANES, _LANES), jnp.float32),  # bce
                            pltpu.VMEM((_SUBLANES, _LANES), jnp.float32),  # p*t
                            pltpu.VMEM((_SUBLANES, _LANES), jnp.float32),  # p+t
                            pltpu.VMEM((1, 1), jnp.float32)]),             # dice score
        compiler_params=pltpu.CompilerParams(
            dimension_semantics=("arbitrary", "arbitrary")),
        cost_estimate=cost,
    )(l3, t3)
    return out[0, 0]


def _reference(logits, targets):
    """Pure-JAX mirror of the PyTorch BCEDiceLoss module."""
    num = logits.shape[0]
    p = jax.nn.sigmoid(logits.astype(jnp.float32))
    t = targets.astype(jnp.float32)
    p_flat = p.reshape(-1)
    t_flat = t.reshape(-1)
    bce = -(t_flat * jnp.maximum(jnp.log(p_flat), -100.0)
            + (1.0 - t_flat) * jnp.maximum(jnp.log(1.0 - p_flat), -100.0))
    bce_loss = jnp.mean(bce)
    m1 = p.reshape(num, -1)
    m2 = t.reshape(num, -1)
    smooth = 1.0
    score = 2.0 * ((m1 * m2).sum(1) + smooth) / (m1.sum(1) + m2.sum(1) + smooth)
    dice_loss = 1.0 - score.sum() / num
    return bce_loss + dice_loss


if __name__ == "__main__":
    key = jax.random.PRNGKey(0)
    k1, k2 = jax.random.split(key)
    B, C, H, W = 2, 4, 16, 16                      # NCHW
    logits = jax.random.normal(k1, (B, C, H, W), dtype=jnp.float32)
    targets = (jax.random.uniform(k2, (B, C, H, W)) > 0.5).astype(jnp.float32)

    loss = bce_dice_loss(logits, targets)
    loss = jax.block_until_ready(loss)

    ref = _reference(logits, targets)
    assert jnp.allclose(loss, ref, rtol=1e-5, atol=1e-5), (loss, ref)
    print("KERNEL_OK")
</pallas_src>

<mosaic_0001>
module attributes {stable_mosaic.version = 11 : i64} {
  func.func @_bce_dice_kernel(%arg0: i32, %arg1: i32, %arg2: memref<1x8x128xf32, #tpu.memory_space<vmem>>, %arg3: memref<1x8x128xf32, #tpu.memory_space<vmem>>, %arg4: memref<1x1xf32, #tpu.memory_space<vmem>>, %arg5: memref<8x128xf32, #tpu.memory_space<vmem>>, %arg6: memref<8x128xf32, #tpu.memory_space<vmem>>, %arg7: memref<8x128xf32, #tpu.memory_space<vmem>>, %arg8: memref<1x1xf32, #tpu.memory_space<vmem>>) attributes {dimension_semantics = [#tpu.dimension_semantics<arbitrary>, #tpu.dimension_semantics<arbitrary>], iteration_bounds = array<i64: 2, 1>, scalar_prefetch = 0 : i64, scratch_operands = 4 : i64, tpu.core_type = #tpu.core_type<tc>, window_params = [{transform_indices = @transform_0, window_bounds = array<i64: 1, 8, 128>}, {transform_indices = @transform_1, window_bounds = array<i64: 1, 8, 128>}, {pipeline_mode = #tpu.pipeline_mode<synchronous>, transform_indices = @transform_2, window_bounds = array<i64: 1, 1>}]} {
    %c0_i32 = arith.constant 0 : i32
    %0 = arith.cmpi eq, %arg0, %c0_i32 : i32
    %c0_i32_0 = arith.constant 0 : i32
    %1 = arith.cmpi eq, %arg1, %c0_i32_0 : i32
    %2 = arith.andi %0, %1 : i1
    %3 = arith.extui %2 : i1 to i32
    %c0_i32_1 = arith.constant 0 : i32
    %4 = arith.cmpi ne, %3, %c0_i32_1 : i32
    scf.if %4 {
      %cst_32 = arith.constant 0.000000e+00 : f32
      %54 = vector.broadcast %cst_32 : f32 to vector<8x128xf32>
      %c0_33 = arith.constant 0 : index
      %c0_34 = arith.constant 0 : index
      %55 = vector.load %arg5[%c0_33, %c0_34] : memref<8x128xf32, #tpu.memory_space<vmem>>, vector<8x128xf32>
      tpu.vector_store %arg5[%c0_33, %c0_34], %54 {strides = array<i32>} : memref<8x128xf32, #tpu.memory_space<vmem>>, vector<8x128xf32>,
      %cst_35 = arith.constant 0.000000e+00 : f32
      %56 = vector.broadcast %cst_35 : f32 to vector<1x1xf32>
      %c0_36 = arith.constant 0 : index
      %c0_37 = arith.constant 0 : index
      %57 = vector.load %arg8[%c0_36, %c0_37] : memref<1x1xf32, #tpu.memory_space<vmem>>, vector<1x1xf32>
      tpu.vector_store %arg8[%c0_36, %c0_37], %56 {strides = array<i32>} : memref<1x1xf32, #tpu.memory_space<vmem>>, vector<1x1xf32>,
    } else {
    }
    %c0_i32_2 = arith.constant 0 : i32
    %5 = arith.cmpi eq, %arg1, %c0_i32_2 : i32
    %6 = arith.extui %5 : i1 to i32
    %c0_i32_3 = arith.constant 0 : i32
    %7 = arith.cmpi ne, %6, %c0_i32_3 : i32
    scf.if %7 {
      %cst_32 = arith.constant 0.000000e+00 : f32
      %54 = vector.broadcast %cst_32 : f32 to vector<8x128xf32>
      %c0_33 = arith.constant 0 : index
      %c0_34 = arith.constant 0 : index
      %55 = vector.load %arg6[%c0_33, %c0_34] : memref<8x128xf32, #tpu.memory_space<vmem>>, vector<8x128xf32>
      tpu.vector_store %arg6[%c0_33, %c0_34], %54 {strides = array<i32>} : memref<8x128xf32, #tpu.memory_space<vmem>>, vector<8x128xf32>,
      %cst_35 = arith.constant 0.000000e+00 : f32
      %56 = vector.broadcast %cst_35 : f32 to vector<8x128xf32>
      %c0_36 = arith.constant 0 : index
      %c0_37 = arith.constant 0 : index
      %57 = vector.load %arg7[%c0_36, %c0_37] : memref<8x128xf32, #tpu.memory_space<vmem>>, vector<8x128xf32>
      tpu.vector_store %arg7[%c0_36, %c0_37], %56 {strides = array<i32>} : memref<8x128xf32, #tpu.memory_space<vmem>>, vector<8x128xf32>,
    } else {
    }
    %c0 = arith.constant 0 : index
    %c0_4 = arith.constant 0 : index
    %c0_5 = arith.constant 0 : index
    %8 = vector.load %arg2[%c0, %c0_4, %c0_5] : memref<1x8x128xf32, #tpu.memory_space<vmem>>, vector<1x8x128xf32>
    %9 = vector.shape_cast %8 : vector<1x8x128xf32> to vector<8x128xf32>
    %c0_6 = arith.constant 0 : index
    %c0_7 = arith.constant 0 : index
    %c0_8 = arith.constant 0 : index
    %10 = vector.load %arg3[%c0_6, %c0_7, %c0_8] : memref<1x8x128xf32, #tpu.memory_space<vmem>>, vector<1x8x128xf32>
    %11 = vector.shape_cast %10 : vector<1x8x128xf32> to vector<8x128xf32>
    %12 = math.absf %9 : vector<8x128xf32>
    %cst = arith.constant 0.000000e+00 : f32
    %13 = vector.broadcast %cst : f32 to vector<8x128xf32>
    %14 = arith.subf %13, %12 : vector<8x128xf32>
    %15 = math.exp %14 : vector<8x128xf32>
    %16 = math.log1p %15 : vector<8x128xf32>
    %cst_9 = arith.constant 0.000000e+00 : f32
    %17 = vector.broadcast %cst_9 : f32 to vector<8x128xf32>
    %18 = arith.maximumf %9, %17 : vector<8x128xf32>
    %19 = arith.addf %16, %18 : vector<8x128xf32>
    %20 = arith.mulf %9, %11 : vector<8x128xf32>
    %21 = arith.subf %19, %20 : vector<8x128xf32>
    %cst_10 = arith.constant 0.000000e+00 : f32
    %22 = vector.broadcast %cst_10 : f32 to vector<8x128xf32>
    %23 = arith.cmpf oge, %9, %22 : vector<8x128xf32>
    %cst_11 = arith.constant 1.000000e+00 : f32
    %24 = vector.broadcast %cst_11 : f32 to vector<8x128xf32>
    %25 = arith.select %23, %24, %15 : vector<8x128xi1>, vector<8x128xf32>
    %cst_12 = arith.constant 1.000000e+00 : f32
    %26 = vector.broadcast %cst_12 : f32 to vector<8x128xf32>
    %27 = arith.addf %26, %15 : vector<8x128xf32>
    %28 = arith.divf %25, %27 : vector<8x128xf32>
    %c0_13 = arith.constant 0 : index
    %c0_14 = arith.constant 0 : index
    %29 = vector.load %arg5[%c0_13, %c0_14] : memref<8x128xf32, #tpu.memory_space<vmem>>, vector<8x128xf32>
    %30 = vector.shape_cast %21 : vector<8x128xf32> to vector<1x8x128xf32>
    %cst_15 = arith.constant dense<0.000000e+00> : vector<8x128xf32>
    %31 = vector.multi_reduction <add>, %30, %cst_15 [0] : vector<1x8x128xf32> to vector<8x128xf32>
    %32 = arith.addf %29, %31 : vector<8x128xf32>
    %c0_16 = arith.constant 0 : index
    %c0_17 = arith.constant 0 : index
    %33 = vector.load %arg5[%c0_16, %c0_17] : memref<8x128xf32, #tpu.memory_space<vmem>>, vector<8x128xf32>
    tpu.vector_store %arg5[%c0_16, %c0_17], %32 {strides = array<i32>} : memref<8x128xf32, #tpu.memory_space<vmem>>, vector<8x128xf32>,
    %c0_18 = arith.constant 0 : index
    %c0_19 = arith.constant 0 : index
    %34 = vector.load %arg6[%c0_18, %c0_19] : memref<8x128xf32, #tpu.memory_space<vmem>>, vector<8x128xf32>
    %35 = arith.mulf %28, %11 : vector<8x128xf32>
    %36 = vector.shape_cast %35 : vector<8x128xf32> to vector<1x8x128xf32>
    %cst_20 = arith.constant dense<0.000000e+00> : vector<8x128xf32>
    %37 = vector.multi_reduction <add>, %36, %cst_20 [0] : vector<1x8x128xf32> to vector<8x128xf32>
    %38 = arith.addf %34, %37 : vector<8x128xf32>
    %c0_21 = arith.constant 0 : index
    %c0_22 = arith.constant 0 : index
    %39 = vector.load %arg6[%c0_21, %c0_22] : memref<8x128xf32, #tpu.memory_space<vmem>>, vector<8x128xf32>
    tpu.vector_store %arg6[%c0_21, %c0_22], %38 {strides = array<i32>} : memref<8x128xf32, #tpu.memory_space<vmem>>, vector<8x128xf32>,
    %c0_23 = arith.constant 0 : index
    %c0_24 = arith.constant 0 : index
    %40 = vector.load %arg7[%c0_23, %c0_24] : memref<8x128xf32, #tpu.memory_space<vmem>>, vector<8x128xf32>
    %41 = arith.addf %28, %11 : vector<8x128xf32>
    %42 = vector.shape_cast %41 : vector<8x128xf32> to vector<1x8x128xf32>
    %cst_25 = arith.constant dense<0.000000e+00> : vector<8x128xf32>
    %43 = vector.multi_reduction <add>, %42, %cst_25 [0] : vector<1x8x128xf32> to vector<8x128xf32>
    %44 = arith.addf %40, %43 : vector<8x128xf32>
    %c0_26 = arith.constant 0 : index
    %c0_27 = arith.constant 0 : index
    %45 = vector.load %arg7[%c0_26, %c0_27] : memref<8x128xf32, #tpu.memory_space<vmem>>, vector<8x128xf32>
    tpu.vector_store %arg7[%c0_26, %c0_27], %44 {strides = array<i32>} : memref<8x128xf32, #tpu.memory_space<vmem>>, vector<8x128xf32>,
    %c0_i32_28 = arith.constant 0 : i32
    %46 = arith.cmpi eq, %arg1, %c0_i32_28 : i32
    %47 = arith.extui %46 : i1 to i32
    %c0_i32_29 = arith.constant 0 : i32
    %48 = arith.cmpi ne, %47, %c0_i32_29 : i32
    scf.if %48 {
      %c0_32 = arith.constant 0 : index
      %c0_33 = arith.constant 0 : index
      %54 = vector.load %arg6[%c0_32, %c0_33] : memref<8x128xf32, #tpu.memory_space<vmem>>, vector<8x128xf32>
      %cst_34 = arith.constant dense<0.000000e+00> : vector<128xf32>
      %55 = vector.multi_reduction <add>, %54, %cst_34 [0] : vector<8x128xf32> to vector<128xf32>
      %56 = vector.shape_cast %55 : vector<128xf32> to vector<1x128xf32>
      %cst_35 = arith.constant dense<0.000000e+00> : vector<1xf32>
      %57 = vector.multi_reduction <add>, %56, %cst_35 [1] : vector<1x128xf32> to vector<1xf32>
      %58 = vector.shape_cast %57 : vector<1xf32> to vector<1x1xf32>
      %c0_36 = arith.constant 0 : index
      %c0_37 = arith.constant 0 : index
      %59 = vector.load %arg7[%c0_36, %c0_37] : memref<8x128xf32, #tpu.memory_space<vmem>>, vector<8x128xf32>
      %cst_38 = arith.constant dense<0.000000e+00> : vector<128xf32>
      %60 = vector.multi_reduction <add>, %59, %cst_38 [0] : vector<8x128xf32> to vector<128xf32>
      %61 = vector.shape_cast %60 : vector<128xf32> to vector<1x128xf32>
      %cst_39 = arith.constant dense<0.000000e+00> : vector<1xf32>
      %62 = vector.multi_reduction <add>, %61, %cst_39 [1] : vector<1x128xf32> to vector<1xf32>
      %63 = vector.shape_cast %62 : vector<1xf32> to vector<1x1xf32>
      %c0_40 = arith.constant 0 : index
      %c0_41 = arith.constant 0 : index
      %64 = vector.load %arg8[%c0_40, %c0_41] : memref<1x1xf32, #tpu.memory_space<vmem>>, vector<1x1xf32>
      %cst_42 = arith.constant 1.000000e+00 : f32
      %65 = vector.broadcast %cst_42 : f32 to vector<1x1xf32>
      %66 = arith.addf %58, %65 : vector<1x1xf32>
      %cst_43 = arith.constant 2.000000e+00 : f32
      %67 = vector.broadcast %cst_43 : f32 to vector<1x1xf32>
      %68 = arith.mulf %67, %66 : vector<1x1xf32>
      %cst_44 = arith.constant 1.000000e+00 : f32
      %69 = vector.broadcast %cst_44 : f32 to vector<1x1xf32>
      %70 = arith.addf %63, %69 : vector<1x1xf32>
      %71 = arith.divf %68, %70 : vector<1x1xf32>
      %72 = arith.addf %64, %71 : vector<1x1xf32>
      %c0_45 = arith.constant 0 : index
      %c0_46 = arith.constant 0 : index
      %73 = vector.load %arg8[%c0_45, %c0_46] : memref<1x1xf32, #tpu.memory_space<vmem>>, vector<1x1xf32>
      tpu.vector_store %arg8[%c0_45, %c0_46], %72 {strides = array<i32>} : memref<1x1xf32, #tpu.memory_space<vmem>>, vector<1x1xf32>,
    } else {
    }
    %c1_i32 = arith.constant 1 : i32
    %49 = arith.cmpi eq, %arg0, %c1_i32 : i32
    %c0_i32_30 = arith.constant 0 : i32
    %50 = arith.cmpi eq, %arg1, %c0_i32_30 : i32
    %51 = arith.andi %49, %50 : i1
    %52 = arith.extui %51 : i1 to i32
    %c0_i32_31 = arith.constant 0 : i32
    %53 = arith.cmpi ne, %52, %c0_i32_31 : i32
    scf.if %53 {
      %c0_32 = arith.constant 0 : index
      %c0_33 = arith.constant 0 : index
      %54 = vector.load %arg5[%c0_32, %c0_33] : memref<8x128xf32, #tpu.memory_space<vmem>>, vector<8x128xf32>
      %cst_34 = arith.constant dense<0.000000e+00> : vector<128xf32>
      %55 = vector.multi_reduction <add>, %54, %cst_34 [0] : vector<8x128xf32> to vector<128xf32>
      %56 = vector.shape_cast %55 : vector<128xf32> to vector<1x128xf32>
      %cst_35 = arith.constant dense<0.000000e+00> : vector<1xf32>
      %57 = vector.multi_reduction <add>, %56, %cst_35 [1] : vector<1x128xf32> to vector<1xf32>
      %58 = vector.shape_cast %57 : vector<1xf32> to vector<1x1xf32>
      %cst_36 = arith.constant 4.8828125E-4 : f32
      %59 = vector.broadcast %cst_36 : f32 to vector<1x1xf32>
      %60 = arith.mulf %58, %59 : vector<1x1xf32>
      %c0_37 = arith.constant 0 : index
      %c0_38 = arith.constant 0 : index
      %61 = vector.load %arg8[%c0_37, %c0_38] : memref<1x1xf32, #tpu.memory_space<vmem>>, vector<1x1xf32>
      %cst_39 = arith.constant 5.000000e-01 : f32
      %62 = vector.broadcast %cst_39 : f32 to vector<1x1xf32>
      %63 = arith.mulf %61, %62 : vector<1x1xf32>
      %cst_40 = arith.constant 1.000000e+00 : f32
      %64 = vector.broadcast %cst_40 : f32 to vector<1x1xf32>
      %65 = arith.subf %64, %63 : vector<1x1xf32>
      %66 = arith.addf %60, %65 : vector<1x1xf32>
      %c0_41 = arith.constant 0 : index
      %c0_42 = arith.constant 0 : index
      %67 = vector.load %arg4[%c0_41, %c0_42] : memref<1x1xf32, #tpu.memory_space<vmem>>, vector<1x1xf32>
      tpu.vector_store %arg4[%c0_41, %c0_42], %66 {strides = array<i32>} : memref<1x1xf32, #tpu.memory_space<vmem>>, vector<1x1xf32>,
    } else {
    }
    return
  }
  func.func @transform_0(%arg0: i32, %arg1: i32) -> (i32, i32, i32) {
    %c0_i32 = arith.constant 0 : i32
    %c0_i32_0 = arith.constant 0 : i32
    return %arg0, %arg1, %c0_i32 : i32, i32, i32
  }
  func.func @transform_1(%arg0: i32, %arg1: i32) -> (i32, i32, i32) {
    %c0_i32 = arith.constant 0 : i32
    %c0_i32_0 = arith.constant 0 : i32
    return %arg0, %arg1, %c0_i32 : i32, i32, i32
  }
  func.func @transform_2(%arg0: i32, %arg1: i32) -> (i32, i32) {
    %c0_i32 = arith.constant 0 : i32
    %c0_i32_0 = arith.constant 0 : i32
    %c0_i32_1 = arith.constant 0 : i32
    return %c0_i32, %c0_i32_0 : i32, i32
  }
}

</mosaic_0001>

<bundles_post_ra>
// kernel: tpu_custom_call.1
= control target key start
LH: loop header
LB: loop body
LE: loop exit
PB: predicated region body
PF: predicated region fallthrough
CT: control target
= control target key end

     0   :  { %7 = vsyncpa [#allocation7], 0  ;;  %s856_s0 = inlined_call_operand.hbm [shape: f32[2,8,128], index: 0, kind: input, shape index: {}]   ;;  %s857_s1 = inlined_call_operand.hbm [shape: f32[2,8,128], index: 1, kind: input, shape index: {}]   ;;  %s858_s2 = inlined_call_operand.hbm [shape: f32[1,1], index: 2, kind: output, shape index: {}]  }
   0x1   :  { %9 = vsyncpa [#allocation7 + $0x1], 0 }
   0x2   :  { %10 = vsyncpa [#allocation10], 0 }
   0x3   :  { %12 = vsyncpa [#allocation10 + $0x1], 0 }
   0x4   :  { %13 = vsyncpa [#allocation8], 0  ;;  %s655_s9 = smov 0   ;;  %s657_s10 = smov 0  }
   0x5   :  { %s659_s11 = smov 0   ;;  %s661_s12 = smov 0  }
   0x6   :  { %s663_s13 = smov 0   ;;  %s665_s14 = smov 0  }
   0x7 LB: > { %s396_s15 = sadd.s32 4294967295, %s634_s14   ;;  %s31_s16 = sadd.s32 1, %s630_s13  ;;  %s634_s14 = sphi %s665_s14, %s19_s14   ;;  %s630_s13 = sphi %s663_s13, %s873_s13   ;;  %s626_s12 = sphi %s661_s12, %s872_s12   ;;  %s622_s11 = sphi %s659_s11, %s871_s11   ;;  %s618_s10 = sphi %s657_s10, %s870_s10   ;;  %s614_s9 = sphi %s655_s9, %s869_s9  }
   0x8   : > { %p33_p0 = scmp.ge.s32.totalorder %s31_s16, 2  ;;  %s40_s17 = sadd.s32 1, %s622_s11 }
   0x9   : > { %p47_p1 = scmp.ne.s32.totalorder %s622_s11, %s618_s10  ;;  %p48_p2 = scmp.eq.s32.totalorder %s634_s14, 0 }
   0xa   : > { %s875_s16 = smov (%p33_p0, %s31_s16), 0  ;;  %p53_p4 = scmp.ne.s32.totalorder %s618_s10, %s614_s9 }
   0xb   : > { %p691_p3 = por %p48_p2, %p47_p1  ;;  %s35_s19 = ssub.s32 %s630_s13, %s875_s16 }
   0xc   : > { %p54_p5 = scmp.eq.s32.totalorder %s396_s15, 0  ;;  %p38_p6 = scmp.eq.s32.totalorder %s35_s19, 0 }
   0xd   : > { %p429_p8 = scmp.lt.s32.totalorder %s634_s14, 2  ;;  %s709_s22 = sand.u32 1, %s622_s11  }
   0xe   : > { %p700_p7 = por %p54_p5, %p53_p4  ;;  %s400_s23 = sshll.u32 %s630_s13, 7 }
   0xf   : > { %s706_s21 = scalar_select %p38_p6, %s622_s11, %s40_s17  }
  0x10   : > { %s861_s20 = scalar_select %p700_p7, 1, 0 }
  0x11   : > { %s399_s24 = sshll.u32 %s709_s22, 3  ;;  %s718_s27 = scalar_lea.hbm %s856_s0, %s400_s23 }
  0x12   : > { %s130_s28 = scalar_lea.vmem [#allocation6], %s399_s24  ;;  %p724_p9 = pnand %p429_p8, %p691_p3 }
  0x13   : > { %s138_s29 = sshll.u32 %s130_s28, 4  ;;  %s127_s3 = scalar_lea.sflag [#allocation7], %s709_s22  ;;  %s728_s29 = int_to_ptr.vmem [resolvable:$true] %s138_s29 }
  0x14   : > { %s490_s4 = scalar_lea.hbm %s718_s27, 128  ;;  %p492_p13 = pneg %p724_p9 }
  0x15   : > { %p491_p12 = scmp.ne.s32.totalorder %s718_s27, %s490_s4  ;;  %s495_s7 = scalar_lea.hbm %s856_s0, 256 }
  0x16   : > { %p496_p2 = scmp.lt.u32.totalorder %s718_s27, %s856_s0  ;;  %p497_p3 = scmp.lt.u32.totalorder %s495_s7, %s490_s4 }
  0x17   : > { %p493_p0 = pnand %p492_p13, %p491_p12  ;;  %p499_p5 = scmp.lt.u32.totalorder %s490_s4, %s718_s27 }
  0x18   : > { %p498_p4 = por %p497_p3, %p496_p2 }
  0x19   : > { %p494_p1 = pneg %p493_p0 }
  0x1a   : > { %p500_p6 = por %p499_p5, %p498_p4 }
  0x1c   : > { %p501_p8 = pnand %p500_p6, %p494_p1 }
  0x1e   : > { %504 = shalt.err (!%p501_p8)
}
  0x1f   : > { %s505_s17 = scalar_lea.vmem %s728_s29, 128  ;;  %s636_s18 = smov [#allocation6]  }
  0x20   : > { %p506_p12 = scmp.ne.s32.totalorder %s728_s29, %s505_s17  ;;  %s510_s19 = sshll.u32 %s636_s18, 4  ;;  %s511_s19 = int_to_ptr.vmem [resolvable:$false] %s510_s19 }
  0x21   : > { %s512_s25 = scalar_lea.vmem %s511_s19, 256  ;;  %p513_p11 = scmp.lt.s32.totalorder %s728_s29, %s511_s19 }
  0x22   : > { %p508_p0 = pnand %p506_p12, %p492_p13  ;;  %p514_p2 = scmp.lt.s32.totalorder %s512_s25, %s505_s17 }
  0x24   : > { %p509_p10 = pneg %p508_p0  ;;  %p515_p3 = por %p514_p2, %p513_p11 }
  0x26   : > { %p516_p4 = pnand %p515_p3, %p509_p10 }
  0x28   : > { %519 = shalt.err (!%p516_p4)
}
  0x29   : > { %425 = dma.hbm_to_vmem [thread:$0]  (!%p724_p9), %s718_s27, 128, %s728_s29, %s127_s3  }
  0x2a   : > { %p863_p1 = scmp.lt.s32.totalorder %s634_s14, 3  ;;  %p864_p5 = scmp.ge.s32.totalorder %s634_s14, 1 }
  0x2b   : > { %s771_s5 = scalar_lea.hbm %s857_s1, %s400_s23  ;;  %s149_s6 = scalar_lea.vmem [#allocation9], %s399_s24 }
  0x2c   : > { %p762_p6 = pnand %p864_p5, %p863_p1  ;;  %s157_s7 = sshll.u32 %s149_s6, 4  ;;  %s158_s7 = int_to_ptr.vmem [resolvable:$true] %s157_s7 }
  0x2d   : > { %s146_s27 = scalar_lea.sflag [#allocation10], %s709_s22  ;;  %s520_s29 = scalar_lea.hbm %s771_s5, 128 }
  0x2e   : > { %s865_s26 = scalar_select %p762_p6, 1, 0 }
  0x2f   : > { %p521_p10 = scmp.ne.s32.totalorder %s771_s5, %s520_s29  ;;  %s525_s23 = scalar_lea.hbm %s857_s1, 256 }
  0x30   : > { %p526_p12 = scmp.lt.u32.totalorder %s771_s5, %s857_s1  ;;  %p527_p0 = scmp.lt.u32.totalorder %s525_s23, %s520_s29 }
  0x31   : > { %p523_p11 = pnand %p521_p10, %p492_p13  ;;  %p529_p3 = scmp.lt.u32.totalorder %s520_s29, %s771_s5 }
  0x32   : > { %p528_p2 = por %p527_p0, %p526_p12 }
  0x33   : > { %p524_p8 = pneg %p523_p11 }
  0x34   : > { %p530_p4 = por %p529_p3, %p528_p2 }
  0x36   : > { %p531_p1 = pnand %p530_p4, %p524_p8 }
  0x38   : > { %534 = shalt.err (!%p531_p1)
}
  0x39   : > { %s535_s22 = scalar_lea.vmem %s158_s7, 128  ;;  %s637_s24 = smov [#allocation9]  }
  0x3a   : > { %p536_p5 = scmp.ne.s32.totalorder %s158_s7, %s535_s22  ;;  %s540_s18 = sshll.u32 %s637_s24, 4  ;;  %s541_s18 = int_to_ptr.vmem [resolvable:$false] %s540_s18 }
  0x3b   : > { %s542_s19 = scalar_lea.vmem %s541_s18, 256  ;;  %p543_p7 = scmp.lt.s32.totalorder %s158_s7, %s541_s18 }
  0x3c   : > { %p538_p10 = pnand %p536_p5, %p492_p13  ;;  %p544_p6 = scmp.lt.s32.totalorder %s542_s19, %s535_s22 }
  0x3e   : > { %p539_p11 = pneg %p538_p10  ;;  %p545_p0 = por %p544_p6, %p543_p7 }
  0x40   : > { %p546_p12 = pnand %p545_p0, %p539_p11 }
  0x42   : > { %549 = shalt.err (!%p546_p12)
}
  0x43   : > { %428 = dma.hbm_to_vmem [thread:$0]  (!%p724_p9), %s771_s5, 128, %s158_s7, %s146_s27  }
  0x44   : > { %p866_p8 = scmp.ne.s32.totalorder %s865_s26, 0 }
  0x45   : > { %s168_s25 = sand.u32 (!%p866_p8), 1, %s618_s10   ;;  %p867_p13 = scmp.ne.s32.totalorder (!%p866_p8), %s861_s20, 0 }
  0x46   : > { %166 = sbr.rel (%p866_p8) target bundleno = 335 (0x14f), region = 28  ;;  %s404_s28 = sshll.u32 (!%p866_p8), %s168_s25, 3 }
  0x47   : > { %s169_s4 = scalar_lea.sflag (!%p866_p8), [#allocation7], %s168_s25  ;;  %s172_s6 = scalar_lea.vmem (!%p866_p8), [#allocation6], %s404_s28 }
  0x4d   : > { %601 = dma.done.wait (%p867_p13), %s169_s4, 128  }
  0x4e   : > { %603 = vsyncadd (%p867_p13), %s169_s4, 4294967168  ;;  %s178_s29 = scalar_lea.sflag [#allocation10], %s168_s25  ;;  %s181_s3 = scalar_lea.vmem [#allocation9], %s404_s28 }
  0x4f   : > { %605 = dma.done.wait (%p867_p13), %s178_s29, 128  }
  0x50   : > { %607 = vsyncadd (%p867_p13), %s178_s29, 4294967168  ;;  %p202_p7 = scmp.eq.s32.totalorder %s626_s12, 0 }
  0x51   : > { %vm209_vm0 = vcmask (%p202_p7), 0   ;;  %v638_v0 = vmov (%p202_p7), 0.0  }
  0x52   : > { %207 = sbr.rel (!%p202_p7) target bundleno = 89 (0x59), region = 40  ;;  %208 = vst [vmem:[#allocation2] sm:$0xff] (%p202_p7), %v638_v0  ;;  %210 = vst.msk [vmem:[#allocation5] sm:$0x1] (%p202_p7), %vm209_vm0, %v638_v0 }
  0x59 PF: > { %v216_v1 = vld [vmem:[%s172_s6] sm:$0xff]  ;;  %v217_v12 = vld [vmem:[%s181_s3] sm:$0xff]  ;;  %p284_p9 = scmp.eq.s32.totalorder %s626_s12, 1  ;;  %vm282_vm3 = vcmask 0  }
  0x5a   : > { %v218_v2 = vand.u32 2147483647, %v216_v1  ;;  %vm235_vm1 = vcmp.ge.f32.partialorder %v216_v1, 0.0  ;;  %v231_v15 = vmax.f32 %v216_v1, 0.0  ;;  %v233_v18 = vmul.f32 %v217_v12, %v216_v1  ;;  %v240_v25 = vld [vmem:[#allocation2] sm:$0xff] }
  0x5b   : > { %v275_v44 = vld [vmem:[#allocation5] sm:$0x1] }
  0x5c   : > { %v219_v3 = vsub.f32 0.0, %v218_v2 }
  0x5e   : > { %v220_v4 = vmul.f32 1.442695, %v219_v3 }
  0x60   : > { %482 = vpow2.f32 %v220_v4 }
  0x6a   : > { %v483_v5 = vpop.eup %482 }
  0x6b   : > { %v222_v6 = vadd.f32 1.0, %v483_v5  ;;  %v225_v7 = vmul.f32 -0.5, %v483_v5  ;;  %v228_v9 = vand.u32 2147483647, %v483_v5  ;;  %v236_v10 = vsel %vm235_vm1, 1.0, %v483_v5 }
  0x6d   : > { %484 = vrcp.f32 %v222_v6  ;;  %v226_v8 = vadd.f32 1.0, %v225_v7  ;;  %vm229_vm2 = vcmp.lt.f32.partialorder %v228_v9, 0.0004427343 }
  0x6e   : > { %486 = vlog2.f32 %v222_v6 }
  0x6f   : > { %v227_v13 = vmul.f32 %v483_v5, %v226_v8 }
  0x77   : > { %v485_v11 = vpop.eup %484 }
  0x78   : > { %v487_v14 = vpop.eup %486  ;;  %v239_v16 = vmul.f32 %v485_v11, %v236_v10 }
  0x79   : > { %v224_v17 = vmul.f32 0.6931472, %v487_v14 }
  0x7a   : > { %v250_v19 = vadd.f32 %v239_v16, %v217_v12  ;;  %v245_v20 = vmul.f32 %v239_v16, %v217_v12 }
  0x7b   : > { %v230_v21 = vsel %vm229_vm2, %v227_v13, %v224_v17 }
  0x7c   : > { %v267_v22 = vrot.slane %v250_v19, 4  ;;  %v232_v23 = vadd.f32 %v231_v15, %v230_v21  ;;  %v258_v24 = vrot.slane %v245_v20, 4 }
  0x7e   : > { %v268_v26 = vadd.f32 %v267_v22, %v250_v19  ;;  %v234_v27 = vsub.f32 %v232_v23, %v233_v18  ;;  %v259_v28 = vadd.f32 %v258_v24, %v245_v20 }
  0x80   : > { %v269_v29 = vrot.slane %v268_v26, 2  ;;  %v242_v30 = vadd.f32 %v240_v25, %v234_v27  ;;  %v260_v31 = vrot.slane %v259_v28, 2 }
  0x82   : > { %v270_v32 = vadd.f32 %v269_v29, %v268_v26  ;;  %243 = vst [vmem:[#allocation2] sm:$0xff] %v242_v30  ;;  %v261_v33 = vadd.f32 %v260_v31, %v259_v28 }
  0x84   : > { %v271_v34 = vrot.slane %v270_v32, 1  ;;  %v262_v35 = vrot.slane %v261_v33, 1 }
  0x86   : > { %v272_v36 = vadd.f32 %v271_v34, %v270_v32  ;;  %v263_v37 = vadd.f32 %v262_v35, %v261_v33 }
  0x88   : > { %273 = vadd.xlane.f32.xlu0 %v272_v36 }
  0x89   : > { %v289_v47 = vld [vmem:[#allocation2] sm:$0xff] (%p284_p9) }
  0x8a   : > { %v290_v48 = vrot.slane (%p284_p9), %v289_v47, 4 }
  0x8c   : > { %264 = vadd.xlane.f32.xlu0 %v263_v37  ;;  %v291_v49 = vadd.f32 (%p284_p9), %v290_v48, %v289_v47 }
  0x8e   : > { %v292_v50 = vrot.slane (%p284_p9), %v291_v49, 2 }
  0x90   : > { %v293_v51 = vadd.f32 (%p284_p9), %v292_v50, %v291_v49 }
  0x92   : > { %v294_v52 = vrot.slane (%p284_p9), %v293_v51, 1 }
  0x94   : > { %v295_v53 = vadd.f32 (%p284_p9), %v294_v52, %v293_v51 }
  0x96   : > { %296 = vadd.xlane.f32.xlu0 (%p284_p9), %v295_v53 }
 0x115   : > { %v274_v38 = vpop.xlane.xlu0 %273 }
 0x116   : > { %v278_v39 = vadd.f32 1.0, %v274_v38 }
 0x118   : > { %488 = vrcp.f32 %v278_v39 }
 0x119   : > { %v265_v40 = vpop.xlane.xlu0 %264 }
 0x11a   : > { %v276_v41 = vadd.f32 1.0, %v265_v40 }
 0x11c   : > { %v277_v42 = vmul.f32 2.0, %v276_v41 }
 0x121   : > { %288 = sbr.rel (!%p284_p9) target bundleno = 310 (0x136), region = 52 }
 0x122   : > { %v489_v43 = vpop.eup %488 }
 0x123   : > { %v280_v45 = vmul.f32 %v489_v43, %v277_v42  ;;  %v297_v57 = vpop.xlane.xlu0 (%p284_p9), %296 }
 0x124   : > { %v298_v58 = vmul.f32 (%p284_p9), 0.00048828125, %v297_v57 }
 0x125   : > { %v281_v46 = vadd.f32 %v280_v45, %v275_v44 }
 0x127   : > { %283 = vst.msk [vmem:[#allocation5] sm:$0x1] %vm282_vm3, %v281_v46 }
 0x12e   : > { %v299_v54 = vld [vmem:[#allocation5] sm:$0x1] }
 0x12f   : > { %v300_v55 = vmul.f32 0.5, %v299_v54 }
 0x131   : > { %v301_v56 = vsub.f32 1.0, %v300_v55 }
 0x133   : > { %v302_v59 = vadd.f32 %v301_v56, %v298_v58 }
 0x135   : > { %304 = vst.msk [vmem:[#allocation11] sm:$0x1] %vm282_vm3, %v302_v59 }
 0x136 PF: > { %p812_p6 = scmp.eq.s32.totalorder %s396_s15, 1  ;;  %s639_s20 = smov [#allocation11]  }
 0x137   : > { %s312_s30 = sshll.u32 %s639_s20, 4  ;;  %s313_s30 = int_to_ptr.vmem [resolvable:$true] %s312_s30 }
 0x138   : > { %s550_s26 = scalar_lea.vmem %s313_s30, 16  ;;  %s556_s5 = scalar_lea.vmem %s313_s30, 32 }
 0x139   : > { %p551_p2 = scmp.ne.s32.totalorder %s313_s30, %s550_s26  ;;  %p557_p1 = scmp.lt.s32.totalorder %s313_s30, %s313_s30 }
 0x13a   : > { %p558_p5 = scmp.lt.s32.totalorder %s556_s5, %s550_s26 }
 0x13b   : > { %p552_p3 = pnand %p551_p2, %p812_p6 }
 0x13c   : > { %p559_p10 = por %p558_p5, %p557_p1 }
 0x13d   : > { %p553_p4 = pneg %p552_p3 }
 0x13f   : > { %p560_p11 = pnand %p559_p10, %p553_p4 }
 0x141   : > { %563 = shalt.err (!%p560_p11)
}
 0x142   : > { %s564_s27 = scalar_lea.hbm %s858_s2, 16 }
 0x143   : > { %p565_p0 = scmp.ne.s32.totalorder %s858_s2, %s564_s27  ;;  %p570_p13 = scmp.lt.u32.totalorder %s564_s27, %s858_s2 }
 0x145   : > { %p566_p12 = pnand %p565_p0, %p812_p6 }
 0x147   : > { %p567_p8 = pneg %p566_p12 }
 0x149   : > { %p572_p7 = pnand %p570_p13, %p567_p8 }
 0x14b   : > { %575 = shalt.err (!%p572_p7)
}
 0x14c   : > { %419 = dma.vmem_to_hbm [thread:$0]  (%p812_p6), %s313_s30, 16, %s858_s2, [#allocation8]  }
 0x14d   : > { %609 = dma.done.wait (%p812_p6), [#allocation8], 16  }
 0x14e   : > { %611 = vsyncadd (%p812_p6), [#allocation8], 4294967280 }
 0x14f PF: > { %s19_s14 = sadd.s32 1, %s634_s14   ;;  %s869_s9 = smov %s618_s10 }
 0x150   : > { %p16_p9 = scmp.ge.s32.totalorder %s19_s14, 4   ;;  %s870_s10 = smov %s622_s11 }
 0x151   : > { %s871_s11 = smov %s706_s21  ;;  %s872_s12 = smov %s630_s13 }
 0x152   : > { %s873_s13 = smov %s875_s16  ;;  %18 = sbr.rel (!%p16_p9) target bundleno = 7 (0x7), region = 94 }
 0x159   :  { %325 = vsyncpa [#allocation7], 1 }
 0x15a   :  { %327 = vsyncpa [#allocation7 + $0x1], 1 }
 0x15b   :  { %328 = vsyncpa [#allocation10], 1 }
 0x15c   :  { %330 = vsyncpa [#allocation10 + $0x1], 1 }
 0x15d   :  { %331 = vsyncpa [#allocation8], 1 }
 0x15e   :  { %333 = vsyncpa [#allocation8 + $0x1], 1 }

</bundles_post_ra>
